<compile_context>
chip_gen: v7x
topology: tpu7x:2x2x1
jax: 0.10.0
libtpu: 0.0.40
codegen_flags: <defaults>
</compile_context>

<pallas_src>
import functools
import math

import jax
import jax.numpy as jnp
import numpy as np
from jax import lax
from jax.experimental import pallas as pl
from jax.experimental.pallas import tpu as pltpu


# ---------------------------------------------------------------------------
# Pass 1: per-head Q/K/V projection + RoPE, applied once per token.
# ---------------------------------------------------------------------------
def _qkv_rope_kernel(x_ref, wq_ref, wk_ref, wv_ref, cos_ref, sin_ref,
                     rotp_ref, q_out, k_out, v_out):
    x = x_ref[0]                      # (TS, D), already in the MXU dtype
    cos = cos_ref[...]                # (TS, hd) f32, tiled full width
    sin = sin_ref[...]                # (TS, hd) f32, sign folded
    rot_p = rotp_ref[...]             # (hd, hd) rotate-half permutation

    def rope(t):                      # t: (TS, hd) f32
        t_rot = jnp.dot(t, rot_p, preferred_element_type=jnp.float32)
        return t * cos + t_rot * sin

    q = jnp.dot(x, wq_ref[0], preferred_element_type=jnp.float32)  # scale folded into Wq
    k = jnp.dot(x, wk_ref[0], preferred_element_type=jnp.float32)
    v = jnp.dot(x, wv_ref[0], preferred_element_type=jnp.float32)

    q_out[0, 0] = rope(q).astype(q_out.dtype)
    k_out[0, 0] = rope(k).astype(k_out.dtype)
    v_out[0, 0] = v.astype(v_out.dtype)


# ---------------------------------------------------------------------------
# Pass 2: causal flash attention + fused output projection (head reduction).
# ---------------------------------------------------------------------------
def _attn_kernel(q_ref, k_ref, v_ref, wo_ref, bo_ref, o_ref, acc_ref, *,
                 n_heads, head_dim, q_tile, mxu_dtype, approx_recip):
    qi = pl.program_id(1)
    h = pl.program_id(2)
    kv_tile = q_tile                  # diagonal tile == q tile index

    q = q_ref[0, 0].astype(mxu_dtype)          # (TQ, hd), RoPE'd, pre-scaled

    def load_kv(j):
        start = pl.multiple_of(j * kv_tile, kv_tile)
        k = k_ref[0, 0, pl.ds(start, kv_tile), :].astype(mxu_dtype)
        v = v_ref[0, 0, pl.ds(start, kv_tile), :].astype(mxu_dtype)
        return k, v

    def scores(k):                              # contract last dims, no transpose
        return lax.dot_general(q, k, (((1,), (1,)), ((), ())),
                               preferred_element_type=jnp.float32)

    def online_update(s, v, m, l, acc):         # flash online-softmax step (f32)
        m_new = jnp.maximum(m, s.max(axis=-1, keepdims=True))
        alpha = jnp.exp(m - m_new)
        p = jnp.exp(s - m_new)
        l_new = alpha * l + p.sum(axis=-1, keepdims=True)
        acc_new = alpha * acc + jnp.dot(p.astype(mxu_dtype), v,
                                        preferred_element_type=jnp.float32)
        return m_new, l_new, acc_new

    def body(j, carry):                         # fully-visible tiles: no mask
        k, v = load_kv(j)
        return online_update(scores(k), v, *carry)

    m0 = jnp.full((q_tile, 1), -jnp.inf, dtype=jnp.float32)
    l0 = jnp.zeros((q_tile, 1), dtype=jnp.float32)
    a0 = jnp.zeros((q_tile, head_dim), dtype=jnp.float32)
    m_i, l_i, acc_pv = lax.fori_loop(0, qi, body, (m0, l0, a0))

    # Diagonal (boundary) tile: the only one that needs the causal mask.
    k, v = load_kv(qi)
    s = scores(k)
    row = lax.broadcasted_iota(jnp.int32, (q_tile, kv_tile), 0)
    col = lax.broadcasted_iota(jnp.int32, (q_tile, kv_tile), 1)
    s = jnp.where(col <= row, s, jnp.float32(-1e30))
    m_i, l_i, acc_pv = online_update(s, v, m_i, l_i, acc_pv)

    out_h = acc_pv * pl.reciprocal(l_i, approx=approx_recip)       # (TQ, hd)
    contrib = jnp.dot(out_h.astype(mxu_dtype), wo_ref[0],
                      preferred_element_type=jnp.float32)          # (TQ, D)

    @pl.when(h == 0)
    def _assign():                    # first head: direct assign (no zero store)
        acc_ref[...] = contrib

    @pl.when(h > 0)
    def _accumulate():
        acc_ref[...] += contrib

    @pl.when(h == n_heads - 1)
    def _finalize():
        o_ref[0] = (acc_ref[...] + bo_ref[...]).astype(o_ref.dtype)


# ---------------------------------------------------------------------------
# Host wrapper
# ---------------------------------------------------------------------------
def causal_self_attention(x, wq_t, wk_t, wv_t, wo_t, bo, cos, sin, n_heads,
                          *, q_tile=None):
    """x: (B, T, D); w*_t: (D, D) pre-transposed (in, out); bo: (D,);
    cos/sin: (T, head_dim//2) RoPE tables."""
    B, T, D = x.shape
    assert D % n_heads == 0
    head_dim = D // n_heads
    half = head_dim // 2
    assert head_dim % 2 == 0
    assert cos.shape == (T, half) and sin.shape == (T, half)

    if q_tile is None:
        # v6e/v5e (128 MiB VMEM) can afford 512 here; keep <= 256 on v7x (64 MiB).
        q_tile = 256 if (T > 256 and T % 256 == 0) else T
    assert T % q_tile == 0
    n_q = T // q_tile
    s_tile = q_tile
    n_s = T // s_tile

    use_bf16 = (x.dtype == jnp.bfloat16)
    mxu_dtype = jnp.bfloat16 if use_bf16 else jnp.float32
    approx_recip = use_bf16            # exact divide in the full-f32 path
    f32 = jnp.float32
    itm = jnp.dtype(mxu_dtype).itemsize

    # Per-head weight blocks, pre-cast to the MXU dtype on the host; the
    # 1/sqrt(head_dim) scale is folded into Wq (RoPE is linear, so pre-scaling
    # commutes with it).
    scale = 1.0 / math.sqrt(head_dim)
    wq_h = (wq_t * scale).reshape(D, n_heads, head_dim).transpose(1, 0, 2).astype(mxu_dtype)
    wk_h = wk_t.reshape(D, n_heads, head_dim).transpose(1, 0, 2).astype(mxu_dtype)
    wv_h = wv_t.reshape(D, n_heads, head_dim).transpose(1, 0, 2).astype(mxu_dtype)
    wo_h = wo_t.reshape(n_heads, head_dim, D).astype(mxu_dtype)
    bo2 = bo.reshape(1, D).astype(f32)
    x_in = x.astype(mxu_dtype)

    # RoPE tables tiled to full head width; sign folded into sin.
    cos_full = jnp.concatenate([cos, cos], axis=-1).astype(f32)       # (T, hd)
    sin_signed = jnp.concatenate([-sin, sin], axis=-1).astype(f32)    # (T, hd)

    # rotate-half permutation matrix: (t @ P)[:, j] = t[:, (j + half) % hd]
    jidx = np.arange(head_dim)
    rot_np = np.zeros((head_dim, head_dim), dtype=np.float32)
    rot_np[(jidx + half) % head_dim, jidx] = 1.0
    rot_p = jnp.asarray(rot_np)

    # ------------------------- Pass 1: Q/K/V + RoPE -------------------------
    qkv_shape = jax.ShapeDtypeStruct((B, n_heads, T, head_dim), mxu_dtype)
    proj_flops = int(6 * B * T * D * D + 4 * B * T * D * head_dim)
    proj_bytes = int(itm * (B * T * D                      # x (resident across heads)
                            + 3 * B * n_s * D * D          # per-head weight streaming
                            + 3 * B * T * D)               # q/k/v outputs
                     + 4 * (2 * T * head_dim + head_dim * head_dim))

    q_all, k_all, v_all = pl.pallas_call(
        _qkv_rope_kernel,
        out_shape=(qkv_shape, qkv_shape, qkv_shape),
        grid_spec=pltpu.PrefetchScalarGridSpec(
            num_scalar_prefetch=0,
            grid=(B, n_s, n_heads),
            in_specs=[
                pl.BlockSpec((1, s_tile, D), lambda b, s, h: (b, s, 0)),     # x tile
                pl.BlockSpec((1, D, head_dim), lambda b, s, h: (h, 0, 0)),   # Wq (scaled)
                pl.BlockSpec((1, D, head_dim), lambda b, s, h: (h, 0, 0)),   # Wk
                pl.BlockSpec((1, D, head_dim), lambda b, s, h: (h, 0, 0)),   # Wv
                pl.BlockSpec((s_tile, head_dim), lambda b, s, h: (s, 0)),    # cos tile
                pl.BlockSpec((s_tile, head_dim), lambda b, s, h: (s, 0)),    # sin tile
                pl.BlockSpec((head_dim, head_dim), lambda b, s, h: (0, 0)),  # rotate-half
            ],
            out_specs=(
                pl.BlockSpec((1, 1, s_tile, head_dim), lambda b, s, h: (b, h, s, 0)),
                pl.BlockSpec((1, 1, s_tile, head_dim), lambda b, s, h: (b, h, s, 0)),
                pl.BlockSpec((1, 1, s_tile, head_dim), lambda b, s, h: (b, h, s, 0)),
            ),
        ),
        compiler_params=pltpu.CompilerParams(
            dimension_semantics=("parallel", "parallel", "arbitrary")),
        cost_estimate=pl.CostEstimate(flops=proj_flops, transcendentals=0,
                                      bytes_accessed=proj_bytes),
    )(x_in, wq_h, wk_h, wv_h, cos_full, sin_signed, rot_p)

    # --------------------- Pass 2: attention + out proj ---------------------
    # Causal work: each q tile touches (qi + 1) KV tiles -> ~T*(T + q_tile)/2 keys.
    attn_flops = int(4 * B * n_heads * (T * (T + q_tile) // 2) * head_dim
                     + 2 * B * T * D * D)
    attn_trans = int(B * n_heads * T * (T + q_tile) // 2)
    attn_bytes = int(itm * (B * T * D                      # Q
                            + 2 * B * n_q * T * D          # K, V re-streamed per q tile
                            + B * n_q * D * D              # Wo re-streamed per q tile
                            + B * T * D)                   # output
                     + 4 * D)

    kernel = functools.partial(
        _attn_kernel, n_heads=n_heads, head_dim=head_dim, q_tile=q_tile,
        mxu_dtype=mxu_dtype, approx_recip=approx_recip)

    return pl.pallas_call(
        kernel,
        out_shape=jax.ShapeDtypeStruct((B, T, D), x.dtype),
        grid_spec=pltpu.PrefetchScalarGridSpec(
            num_scalar_prefetch=0,
            grid=(B, n_q, n_heads),
            in_specs=[
                pl.BlockSpec((1, 1, q_tile, head_dim), lambda b, q, h: (b, h, q, 0)),  # Q tile
                pl.BlockSpec((1, 1, T, head_dim), lambda b, q, h: (b, h, 0, 0)),       # K (head)
                pl.BlockSpec((1, 1, T, head_dim), lambda b, q, h: (b, h, 0, 0)),       # V (head)
                pl.BlockSpec((1, head_dim, D), lambda b, q, h: (h, 0, 0)),             # Wo row blk
                pl.BlockSpec((1, D), lambda b, q, h: (0, 0)),                          # out bias
            ],
            out_specs=pl.BlockSpec((1, q_tile, D), lambda b, q, h: (b, q, 0)),
            scratch_shapes=[pltpu.VMEM((q_tile, D), jnp.float32)],
        ),
        compiler_params=pltpu.CompilerParams(
            dimension_semantics=("parallel", "parallel", "arbitrary")),
        cost_estimate=pl.CostEstimate(flops=attn_flops, transcendentals=attn_trans,
                                      bytes_accessed=attn_bytes),
    )(q_all, k_all, v_all, wo_h, bo2)


# ---------------------------------------------------------------------------
# Pure-JAX reference matching the PyTorch module semantics.
# ---------------------------------------------------------------------------
def _reference(x, wq_t, wk_t, wv_t, wo_t, bo, cos, sin, n_heads):
    B, T, D = x.shape
    hd = D // n_heads
    half = hd // 2
    xf = x.astype(jnp.float32)

    def proj(w):
        return (xf @ w).reshape(B, T, n_heads, hd).transpose(0, 2, 1, 3)

    def rope(t):
        tr, ti = t[..., :half], t[..., half:]
        c, s = cos[None, None], sin[None, None]
        return jnp.concatenate([tr * c - ti * s, tr * s + ti * c], axis=-1)

    q, k, v = rope(proj(wq_t)), rope(proj(wk_t)), proj(wv_t)
    s = jnp.einsum("bhqd,bhkd->bhqk", q, k) / jnp.sqrt(jnp.float32(hd))
    mask = jnp.tril(jnp.ones((T, T), dtype=bool))
    s = jnp.where(mask, s, -jnp.inf)
    p = jax.nn.softmax(s, axis=-1)
    o = jnp.einsum("bhqk,bhkd->bhqd", p, v).transpose(0, 2, 1, 3).reshape(B, T, D)
    return o @ wo_t + bo


if __name__ == "__main__":
    # Small shapes consistent with the module's forward pass.
    B, T = 2, 8
    dim, n_heads, max_length = 32, 4, 16
    head_dim = dim // n_heads

    key = jax.random.PRNGKey(0)
    kx, kq, kk, kv, ko, kb = jax.random.split(key, 6)

    x = jax.random.normal(kx, (B, T, dim), dtype=jnp.float32)

    # PyTorch Linear weight is (out, in); store the transpose (in, out) so the
    # kernels compute x @ W directly.
    wscale = 0.02
    wq_t = wscale * jax.random.normal(kq, (dim, dim), dtype=jnp.float32)
    wk_t = wscale * jax.random.normal(kk, (dim, dim), dtype=jnp.float32)
    wv_t = wscale * jax.random.normal(kv, (dim, dim), dtype=jnp.float32)
    wo_t = wscale * jax.random.normal(ko, (dim, dim), dtype=jnp.float32)
    bo = wscale * jax.random.normal(kb, (dim,), dtype=jnp.float32)

    # RoPE tables (same formula as RotatoryPositionalEncoding), sliced to T.
    positions = jnp.arange(max_length, dtype=jnp.float32)[:, None]           # (L, 1)
    theta = 1.0 / (10000.0 ** (jnp.arange(0, head_dim, 2, dtype=jnp.float32) / head_dim))
    pos_theta = positions * theta[None, :]                                   # (L, hd//2)
    cos = jnp.cos(pos_theta)[:T]
    sin = jnp.sin(pos_theta)[:T]

    # Full-f32 path: strict check against the reference.
    out = causal_self_attention(x, wq_t, wk_t, wv_t, wo_t, bo, cos, sin, n_heads)
    out = jax.block_until_ready(out)
    ref = _reference(x, wq_t, wk_t, wv_t, wo_t, bo, cos, sin, n_heads)
    np.testing.assert_allclose(np.asarray(out), np.asarray(ref), atol=1e-4, rtol=1e-4)

    # bf16 MXU-operand path (f32 accumulation): loose check.
    out_bf = causal_self_attention(x.astype(jnp.bfloat16), wq_t, wk_t, wv_t,
                                   wo_t, bo, cos, sin, n_heads)
    out_bf = jax.block_until_ready(out_bf)
    np.testing.assert_allclose(np.asarray(out_bf, dtype=np.float32),
                               np.asarray(ref), atol=5e-2, rtol=5e-2)

    print("KERNEL_OK")
</pallas_src>

<mosaic_0001>
module attributes {stable_mosaic.version = 11 : i64} {
  func.func @_qkv_rope_kernel(%arg0: i32, %arg1: i32, %arg2: i32, %arg3: memref<1x8x32xf32, #tpu.memory_space<vmem>>, %arg4: memref<1x32x8xf32, #tpu.memory_space<vmem>>, %arg5: memref<1x32x8xf32, #tpu.memory_space<vmem>>, %arg6: memref<1x32x8xf32, #tpu.memory_space<vmem>>, %arg7: memref<8x8xf32, #tpu.memory_space<vmem>>, %arg8: memref<8x8xf32, #tpu.memory_space<vmem>>, %arg9: memref<8x8xf32, #tpu.memory_space<vmem>>, %arg10: memref<1x1x8x8xf32, #tpu.memory_space<vmem>>, %arg11: memref<1x1x8x8xf32, #tpu.memory_space<vmem>>, %arg12: memref<1x1x8x8xf32, #tpu.memory_space<vmem>>) attributes {dimension_semantics = [#tpu.dimension_semantics<parallel>, #tpu.dimension_semantics<parallel>, #tpu.dimension_semantics<arbitrary>], iteration_bounds = array<i64: 2, 1, 4>, scalar_prefetch = 0 : i64, scratch_operands = 0 : i64, tpu.core_type = #tpu.core_type<tc>, window_params = [{transform_indices = @transform_0, window_bounds = array<i64: 1, 8, 32>}, {transform_indices = @transform_1, window_bounds = array<i64: 1, 32, 8>}, {transform_indices = @transform_2, window_bounds = array<i64: 1, 32, 8>}, {transform_indices = @transform_3, window_bounds = array<i64: 1, 32, 8>}, {transform_indices = @transform_4, window_bounds = array<i64: 8, 8>}, {transform_indices = @transform_5, window_bounds = array<i64: 8, 8>}, {pipeline_mode = #tpu.pipeline_mode<synchronous>, transform_indices = @transform_6, window_bounds = array<i64: 8, 8>}, {transform_indices = @transform_7, window_bounds = array<i64: 1, 1, 8, 8>}, {transform_indices = @transform_8, window_bounds = array<i64: 1, 1, 8, 8>}, {transform_indices = @transform_9, window_bounds = array<i64: 1, 1, 8, 8>}]} {
    %c0 = arith.constant 0 : index
    %c0_0 = arith.constant 0 : index
    %c0_1 = arith.constant 0 : index
    %0 = vector.load %arg3[%c0, %c0_0, %c0_1] : memref<1x8x32xf32, #tpu.memory_space<vmem>>, vector<1x8x32xf32>
    %1 = vector.shape_cast %0 : vector<1x8x32xf32> to vector<8x32xf32>
    %c0_2 = arith.constant 0 : index
    %c0_3 = arith.constant 0 : index
    %2 = vector.load %arg7[%c0_2, %c0_3] : memref<8x8xf32, #tpu.memory_space<vmem>>, vector<8x8xf32>
    %c0_4 = arith.constant 0 : index
    %c0_5 = arith.constant 0 : index
    %3 = vector.load %arg8[%c0_4, %c0_5] : memref<8x8xf32, #tpu.memory_space<vmem>>, vector<8x8xf32>
    %c0_6 = arith.constant 0 : index
    %c0_7 = arith.constant 0 : index
    %4 = vector.load %arg9[%c0_6, %c0_7] : memref<8x8xf32, #tpu.memory_space<vmem>>, vector<8x8xf32>
    %c0_8 = arith.constant 0 : index
    %c0_9 = arith.constant 0 : index
    %c0_10 = arith.constant 0 : index
    %5 = vector.load %arg4[%c0_8, %c0_9, %c0_10] : memref<1x32x8xf32, #tpu.memory_space<vmem>>, vector<1x32x8xf32>
    %6 = vector.shape_cast %5 : vector<1x32x8xf32> to vector<32x8xf32>
    %cst = arith.constant dense<0.000000e+00> : vector<8x8xf32>
    %7 = tpu.matmul %1, %6, %cst {dimension_numbers = #tpu.dot_dimension_numbers<[1], [0], [0], [1], [0, 0, 1, 1], [], []>} : vector<8x32xf32>, vector<32x8xf32>, vector<8x8xf32> -> vector<8x8xf32>
    %c0_11 = arith.constant 0 : index
    %c0_12 = arith.constant 0 : index
    %c0_13 = arith.constant 0 : index
    %8 = vector.load %arg5[%c0_11, %c0_12, %c0_13] : memref<1x32x8xf32, #tpu.memory_space<vmem>>, vector<1x32x8xf32>
    %9 = vector.shape_cast %8 : vector<1x32x8xf32> to vector<32x8xf32>
    %cst_14 = arith.constant dense<0.000000e+00> : vector<8x8xf32>
    %10 = tpu.matmul %1, %9, %cst_14 {dimension_numbers = #tpu.dot_dimension_numbers<[1], [0], [0], [1], [0, 0, 1, 1], [], []>} : vector<8x32xf32>, vector<32x8xf32>, vector<8x8xf32> -> vector<8x8xf32>
    %c0_15 = arith.constant 0 : index
    %c0_16 = arith.constant 0 : index
    %c0_17 = arith.constant 0 : index
    %11 = vector.load %arg6[%c0_15, %c0_16, %c0_17] : memref<1x32x8xf32, #tpu.memory_space<vmem>>, vector<1x32x8xf32>
    %12 = vector.shape_cast %11 : vector<1x32x8xf32> to vector<32x8xf32>
    %cst_18 = arith.constant dense<0.000000e+00> : vector<8x8xf32>
    %13 = tpu.matmul %1, %12, %cst_18 {dimension_numbers = #tpu.dot_dimension_numbers<[1], [0], [0], [1], [0, 0, 1, 1], [], []>} : vector<8x32xf32>, vector<32x8xf32>, vector<8x8xf32> -> vector<8x8xf32>
    %cst_19 = arith.constant dense<0.000000e+00> : vector<8x8xf32>
    %14 = tpu.matmul %7, %4, %cst_19 {dimension_numbers = #tpu.dot_dimension_numbers<[1], [0], [0], [1], [0, 0, 1, 1], [], []>} : vector<8x8xf32>, vector<8x8xf32>, vector<8x8xf32> -> vector<8x8xf32>
    %15 = arith.mulf %7, %2 : vector<8x8xf32>
    %16 = arith.mulf %14, %3 : vector<8x8xf32>
    %17 = arith.addf %15, %16 : vector<8x8xf32>
    %c0_20 = arith.constant 0 : index
    %c0_21 = arith.constant 0 : index
    %c0_22 = arith.constant 0 : index
    %c0_23 = arith.constant 0 : index
    %18 = vector.load %arg10[%c0_20, %c0_21, %c0_22, %c0_23] : memref<1x1x8x8xf32, #tpu.memory_space<vmem>>, vector<1x1x8x8xf32>
    %19 = vector.shape_cast %18 : vector<1x1x8x8xf32> to vector<8x8xf32>
    %20 = vector.shape_cast %17 : vector<8x8xf32> to vector<1x1x8x8xf32>
    tpu.vector_store %arg10[%c0_20, %c0_21, %c0_22, %c0_23], %20 {strides = array<i32>} : memref<1x1x8x8xf32, #tpu.memory_space<vmem>>, vector<1x1x8x8xf32>,
    %cst_24 = arith.constant dense<0.000000e+00> : vector<8x8xf32>
    %21 = tpu.matmul %10, %4, %cst_24 {dimension_numbers = #tpu.dot_dimension_numbers<[1], [0], [0], [1], [0, 0, 1, 1], [], []>} : vector<8x8xf32>, vector<8x8xf32>, vector<8x8xf32> -> vector<8x8xf32>
    %22 = arith.mulf %10, %2 : vector<8x8xf32>
    %23 = arith.mulf %21, %3 : vector<8x8xf32>
    %24 = arith.addf %22, %23 : vector<8x8xf32>
    %c0_25 = arith.constant 0 : index
    %c0_26 = arith.constant 0 : index
    %c0_27 = arith.constant 0 : index
    %c0_28 = arith.constant 0 : index
    %25 = vector.load %arg11[%c0_25, %c0_26, %c0_27, %c0_28] : memref<1x1x8x8xf32, #tpu.memory_space<vmem>>, vector<1x1x8x8xf32>
    %26 = vector.shape_cast %25 : vector<1x1x8x8xf32> to vector<8x8xf32>
    %27 = vector.shape_cast %24 : vector<8x8xf32> to vector<1x1x8x8xf32>
    tpu.vector_store %arg11[%c0_25, %c0_26, %c0_27, %c0_28], %27 {strides = array<i32>} : memref<1x1x8x8xf32, #tpu.memory_space<vmem>>, vector<1x1x8x8xf32>,
    %c0_29 = arith.constant 0 : index
    %c0_30 = arith.constant 0 : index
    %c0_31 = arith.constant 0 : index
    %c0_32 = arith.constant 0 : index
    %28 = vector.load %arg12[%c0_29, %c0_30, %c0_31, %c0_32] : memref<1x1x8x8xf32, #tpu.memory_space<vmem>>, vector<1x1x8x8xf32>
    %29 = vector.shape_cast %28 : vector<1x1x8x8xf32> to vector<8x8xf32>
    %30 = vector.shape_cast %13 : vector<8x8xf32> to vector<1x1x8x8xf32>
    tpu.vector_store %arg12[%c0_29, %c0_30, %c0_31, %c0_32], %30 {strides = array<i32>} : memref<1x1x8x8xf32, #tpu.memory_space<vmem>>, vector<1x1x8x8xf32>,
    return
  }
  func.func @transform_0(%arg0: i32, %arg1: i32, %arg2: i32) -> (i32, i32, i32) {
    %c0_i32 = arith.constant 0 : i32
    %c0_i32_0 = arith.constant 0 : i32
    return %arg0, %arg1, %c0_i32 : i32, i32, i32
  }
  func.func @transform_1(%arg0: i32, %arg1: i32, %arg2: i32) -> (i32, i32, i32) {
    %c0_i32 = arith.constant 0 : i32
    %c0_i32_0 = arith.constant 0 : i32
    %c0_i32_1 = arith.constant 0 : i32
    return %arg2, %c0_i32, %c0_i32_0 : i32, i32, i32
  }
  func.func @transform_2(%arg0: i32, %arg1: i32, %arg2: i32) -> (i32, i32, i32) {
    %c0_i32 = arith.constant 0 : i32
    %c0_i32_0 = arith.constant 0 : i32
    %c0_i32_1 = arith.constant 0 : i32
    return %arg2, %c0_i32, %c0_i32_0 : i32, i32, i32
  }
  func.func @transform_3(%arg0: i32, %arg1: i32, %arg2: i32) -> (i32, i32, i32) {
    %c0_i32 = arith.constant 0 : i32
    %c0_i32_0 = arith.constant 0 : i32
    %c0_i32_1 = arith.constant 0 : i32
    return %arg2, %c0_i32, %c0_i32_0 : i32, i32, i32
  }
  func.func @transform_4(%arg0: i32, %arg1: i32, %arg2: i32) -> (i32, i32) {
    %c0_i32 = arith.constant 0 : i32
    %c0_i32_0 = arith.constant 0 : i32
    return %arg1, %c0_i32 : i32, i32
  }
  func.func @transform_5(%arg0: i32, %arg1: i32, %arg2: i32) -> (i32, i32) {
    %c0_i32 = arith.constant 0 : i32
    %c0_i32_0 = arith.constant 0 : i32
    return %arg1, %c0_i32 : i32, i32
  }
  func.func @transform_6(%arg0: i32, %arg1: i32, %arg2: i32) -> (i32, i32) {
    %c0_i32 = arith.constant 0 : i32
    %c0_i32_0 = arith.constant 0 : i32
    %c0_i32_1 = arith.constant 0 : i32
    return %c0_i32, %c0_i32_0 : i32, i32
  }
  func.func @transform_7(%arg0: i32, %arg1: i32, %arg2: i32) -> (i32, i32, i32, i32) {
    %c0_i32 = arith.constant 0 : i32
    %c0_i32_0 = arith.constant 0 : i32
    return %arg0, %arg2, %arg1, %c0_i32 : i32, i32, i32, i32
  }
  func.func @transform_8(%arg0: i32, %arg1: i32, %arg2: i32) -> (i32, i32, i32, i32) {
    %c0_i32 = arith.constant 0 : i32
    %c0_i32_0 = arith.constant 0 : i32
    return %arg0, %arg2, %arg1, %c0_i32 : i32, i32, i32, i32
  }
  func.func @transform_9(%arg0: i32, %arg1: i32, %arg2: i32) -> (i32, i32, i32, i32) {
    %c0_i32 = arith.constant 0 : i32
    %c0_i32_0 = arith.constant 0 : i32
    return %arg0, %arg2, %arg1, %c0_i32 : i32, i32, i32, i32
  }
}

</mosaic_0001>

<bundles_post_ra>
// kernel: tpu_custom_call.1
= control target key start
LH: loop header
LB: loop body
LE: loop exit
PB: predicated region body
PF: predicated region fallthrough
CT: control target
= control target key end

     0   :  { %s1815_s0 = inlined_call_operand.vmem [shape: f32[2,8,32], index: 0, kind: input, shape index: {}]   ;;  %s1816_s1 = inlined_call_operand.vmem [shape: f32[4,32,8], index: 1, kind: input, shape index: {}]   ;;  %s1817_s2 = inlined_call_operand.vmem [shape: f32[4,32,8], index: 2, kind: input, shape index: {}]   ;;  %s1818_s3 = inlined_call_operand.vmem [shape: f32[4,32,8], index: 3, kind: input, shape index: {}]   ;;  %s1819_s4 = inlined_call_operand.vmem [shape: f32[8,8], index: 4, kind: input, shape index: {}]   ;;  %s1820_s5 = inlined_call_operand.vmem [shape: f32[8,8], index: 5, kind: input, shape index: {}]   ;;  %s1821_s6 = inlined_call_operand.vmem [shape: f32[8,8], index: 6, kind: input, shape index: {}]   ;;  %s1822_s7 = inlined_call_operand.hbm [shape: f32[2,4,8,8], index: 7, kind: output, shape index: {0}]   ;;  %s1823_s8 = inlined_call_operand.hbm [shape: f32[2,4,8,8], index: 8, kind: output, shape index: {1}]   ;;  %s1824_s9 = inlined_call_operand.hbm [shape: f32[2,4,8,8], index: 9, kind: output, shape index: {2}]  }
   0x1   :  { %1830 = sst [smem:[#allocation11_spill]] %s1815_s0 }
   0x2   :  { %1831 = sst [smem:[#allocation12_spill]] %s1816_s1 }
   0x3   :  { %1832 = sst [smem:[#allocation13_spill]] %s1817_s2 }
   0x4   :  { %1833 = sst [smem:[#allocation14_spill]] %s1818_s3 }
   0x5   :  { %15 = vsyncpa [#allocation3], 0 }
   0x6   :  { %17 = vsyncpa [#allocation3 + $0x1], 0 }
   0x7   :  { %18 = vsyncpa [#allocation5], 0 }
   0x8   :  { %20 = vsyncpa [#allocation5 + $0x1], 0  ;;  %s1551_s30 = smov 0   ;;  %s1553_s10 = smov 0  }
   0x9   :  { %s1555_s11 = smov 0   ;;  %s1557_s12 = smov 0  }
   0xa   :  { %s1559_s13 = smov 0   ;;  %s1561_s14 = smov 0  }
   0xb   :  { %s1563_s15 = smov 0   ;;  %s1565_s16 = smov 0  }
   0xc LB: > { %s1826_s17 = sadd.s32 4294967295, %s1493_s16   ;;  %s1825_s18 = sadd.s32 4294967294, %s1493_s16   ;;  %s1493_s16 = sphi %s1565_s16, %s26_s16   ;;  %s1489_s15 = sphi %s1563_s15, %s1853_s15   ;;  %s1485_s14 = sphi %s1561_s14, %s1852_s14   ;;  %s1481_s13 = sphi %s1559_s13, %s1851_s13   ;;  %s1477_s12 = sphi %s1557_s12, %s1850_s12   ;;  %s1473_s11 = sphi %s1555_s11, %s1849_s11   ;;  %s1469_s10 = sphi %s1553_s10, %s1848_s10   ;;  %s1465_s30 = sphi %s1551_s30, %s1847_s30  }
   0xd   : > { %s38_s19 = sadd.s32 1, %s1485_s14  ;;  %s45_s20 = sadd.s32 1, %s1489_s15 }
   0xe   : > { %p39_p0 = scmp.ge.s32.totalorder %s38_s19, 4  ;;  %p245_p1 = scmp.ne.s32.totalorder %s1473_s11, %s1469_s10 }
   0xf   : > { %p246_p2 = scmp.eq.s32.totalorder %s1826_s17, 7  ;;  %p251_p5 = scmp.ne.s32.totalorder %s1469_s10, %s1465_s30 }
  0x10   : > { %s1855_s19 = smov (%p39_p0, %s38_s19), 0  ;;  %s1857_s20 = smov (!%p39_p0, %s45_s20), %s1489_s15 }
  0x11   : > { %1834 = sst [smem:[#allocation9_spill]] %s1855_s19  ;;  %s229_s21 = ssub.s32 %s1485_s14, %s1855_s19 }
  0x12   : > { %p1604_p3 = por %p246_p2, %p245_p1  ;;  %p47_p4 = scmp.ge.s32.totalorder %s1857_s20, 2 }
  0x13   : > { %p252_p6 = scmp.eq.s32.totalorder %s1825_s18, 7  ;;  %p1145_p7 = scmp.ge.s32.totalorder %s1493_s16, 1 }
  0x14   : > { %s1859_s20 = smov (%p47_p4, %s1857_s20), 0  ;;  %p381_p9 = scmp.lt.s32.totalorder %s1493_s16, 9 }
  0x15   : > { %1836 = sst [smem:[#allocation10_spill]] %s1859_s20  ;;  %p1615_p8 = por %p252_p6, %p251_p5 }
  0x16   : > { %s228_s24 = ssub.s32 %s1489_s15, %s1859_s20  ;;  %s235_s25 = sadd.s32 1, %s1473_s11 }
  0x17   : > { %s230_s26 = sor.u32 %s229_s21, %s228_s24  ;;  %p382_p10 = pnand %p1145_p7, %p381_p9 }
  0x18   : > { %p233_p11 = scmp.eq.s32.totalorder %s230_s26, 0  ;;  %p459_p12 = scmp.lt.s32.totalorder (!%p382_p10), %s1477_s12, 3  ;;  %v1495_v0 = vmov (!%p382_p10), 0.0|0.0   ;;  %vm1496_vm0 = vmmov (!%p382_p10), 0   ;;  %v1497_v1 = vmov (!%p382_p10), 0.0   ;;  %vm490_vm1 = vcmask (!%p382_p10), 261120  }
  0x19   : > { %385 = sbr.rel (%p382_p10) target bundleno = 534 (0x216), region = 48  ;;  %p452_p13 = scmp.lt.s32.totalorder (!%p382_p10), %s1481_s13, 1  ;;  %1237 = vmatprep.subr.bf16.mxu0 (!%p382_p10), %v1495_v0  ;;  %1243 = vmatprep.subr.bf16.mxu1 (!%p382_p10), %v1495_v0  ;;  %v485_v15 = vld [vmem:[%s1821_s6] sm:$0xff] (!%p382_p10)  ;;  %vm712_vm2 = vcmask (!%p382_p10), 64512  }
  0x1a   : > { %s1624_s27 = scalar_select %p233_p11, %s1473_s11, %s235_s25  }
  0x1b   : > { %1202 = vmatprep.mubr.msk.f32.mxu0 (!%p382_p10), %vm1496_vm0, %v1497_v1  ;;  %1213 = vmatprep.mubr.msk.f32.mxu1 (!%p382_p10), %vm1496_vm0, %v1497_v1  ;;  %s1838_s1 = sld [smem:[#allocation12_spill]] (!%p382_p10)  ;;  %s1839_s2 = sld [smem:[#allocation13_spill]] (!%p382_p10)  ;;  %v483_v28 = vld [vmem:[%s1819_s4] sm:$0xff] (!%p382_p10) }
  0x1c   : > { %s1840_s0 = sld [smem:[#allocation11_spill]] (!%p382_p10)  ;;  %s1841_s3 = sld [smem:[#allocation14_spill]] (!%p382_p10)  ;;  %v484_v29 = vld [vmem:[%s1820_s5] sm:$0xff] (!%p382_p10) }
  0x1d   : > { %s1164_s24 = sshll.u32 (!%p382_p10), %s1481_s13, 2  ;;  %s1498_s17 = smov (!%p382_p10), [#allocation2]  }
  0x20   : > { %s460_s28 = scalar_select %p459_p12, %s1477_s12, 3 }
  0x21   : > { %s453_s29 = scalar_select %p452_p13, %s1481_s13, 1 }
  0x22   : > { %s1632_s21 = sshll.u32 %s460_s28, 5  ;;  %s1842_s13 = sadd.s32 4294967295, %s1493_s16  }
  0x23   : > { %s463_s26 = scalar_lea.vmem %s1838_s1, %s1632_s21  ;;  %s468_s20 = scalar_lea.vmem %s1839_s2, %s1632_s21 }
  0x24   : > { %v486_v2 = vld [vmem:[%s463_s26] sm:$0xff]  ;;  %v487_v3 = vld [vmem:[%s463_s26 + $0x8] sm:$0xff]  ;;  %v488_v4 = vld [vmem:[%s463_s26 + $0x10] sm:$0xff]  ;;  %s1149_s19 = sshll.u32 %s453_s29, 3  ;;  %s473_s29 = scalar_lea.vmem %s1841_s3, %s1632_s21 }
  0x25   : > { %v1238_v5 = vpack.c.bf16 %v487_v3, %v486_v2  ;;  %v564_v6 = vld [vmem:[%s468_s20] sm:$0xff]  ;;  %v565_v7 = vld [vmem:[%s468_s20 + $0x8] sm:$0xff]  ;;  %v489_v8 = vld [vmem:[%s463_s26 + $0x18] sm:$0xff]  ;;  %s458_s25 = scalar_lea.vmem %s1840_s0, %s1149_s19  ;;  %s435_s21 = sand.u32 1, %s1469_s10  }
  0x26   : > { %v1244_v9 = vpack.c.bf16 %v565_v7, %v564_v6  ;;  %v566_v10 = vld [vmem:[%s468_s20 + $0x10] sm:$0xff]  ;;  %v567_v11 = vld [vmem:[%s468_s20 + $0x18] sm:$0xff]  ;;  %v1241_v12 = vpack.c.bf16 %v489_v8, %v488_v4  ;;  %v482_v14 = vld [vmem:[%s458_s25] sm:$0xff]  ;;  %s1661_s26 = sshll.u32 %s435_s21, 3  ;;  %s891_s25 = sadd.s32 %s1477_s12, %s1164_s24 }
  0x27   : > { %1239 = vmatpush3.bf16.msra.mxu0 %v1238_v5  ;;  %v1247_v13 = vpack.c.bf16 %v567_v11, %v566_v10  ;;  %v638_v16 = vld [vmem:[%s473_s29] sm:$0xff]  ;;  %v639_v17 = vld [vmem:[%s473_s29 + $0x8] sm:$0xff]  ;;  %v640_v19 = vld [vmem:[%s473_s29 + $0x10] sm:$0xff]  ;;  %s451_s28 = scalar_lea.vmem [#allocation6], %s1661_s26  ;;  %s437_s0 = scalar_lea.vmem [#allocation2], %s1661_s26 }
  0x28   : > { %1240 = vmatprep.subr.bf16.mxu0 %v1495_v0  ;;  %1245 = vmatpush3.bf16.msra.mxu1 %v1244_v9  ;;  %v1250_v18 = vpack.c.bf16 %v639_v17, %v638_v16  ;;  %v641_v20 = vld [vmem:[%s473_s29 + $0x18] sm:$0xff]  ;;  %s1673_s29 = sshll.u32 %s891_s25, 7  ;;  %s895_s1 = sshll.u32 %s437_s0, 4  ;;  %s1686_s1 = int_to_ptr.vmem [resolvable:$true] %s895_s1 }
  0x29   : > { %1246 = vmatprep.subr.bf16.mxu1 %v1495_v0  ;;  %v1253_v21 = vpack.c.bf16 %v641_v20, %v640_v19  ;;  %s1678_s12 = sand.u32 1, %s1842_s13   ;;  %s1684_s18 = scalar_lea.hbm %s1822_s7, %s1673_s29 }
  0x2a   : > { %s1829_s25 = scalar_lea.vmem [#allocation4], %s1661_s26  ;;  %s1693_s20 = sshll.u32 %s451_s28, 4  ;;  %s1727_s20 = int_to_ptr.vmem [resolvable:$true] %s1693_s20 }
  0x2b   : > { %1242 = vmatpush3.bf16.msra.mxu0 %v1241_v12  ;;  %s1691_s19 = sshll.u32 %s1829_s25, 4  ;;  %s869_s13 = scalar_lea.sflag [#allocation3], %s435_s21  ;;  %s1724_s19 = int_to_ptr.vmem [resolvable:$true] %s1691_s19 }
  0x2c   : > { %1248 = vmatpush3.bf16.msra.mxu1 %v1247_v13  ;;  %1249 = vmatprep.subr.bf16.mxu0 %v1495_v0  ;;  %s1339_s24 = scalar_lea.vmem %s1686_s1, 128  ;;  %s1343_s2 = sshll.u32 %s1498_s17, 4  ;;  %s1344_s2 = int_to_ptr.vmem [resolvable:$false] %s1343_s2 }
  0x2d   : > { %1227 = vmatprep.subr.mxu1 %v1497_v1  ;;  %p1340_p0 = scmp.ne.s32.totalorder %s1686_s1, %s1339_s24  ;;  %s1345_s3 = scalar_lea.vmem %s1344_s2, 256 }
  0x2e   : > { %1203 = vmatmul.mubr.msk.f32.vlgmr.msra.gmra.mrb[0].mxu0 %vm490_vm1, %v482_v14  ;;  %p1346_p4 = scmp.lt.s32.totalorder %s1686_s1, %s1344_s2  ;;  %p1347_p5 = scmp.lt.s32.totalorder %s1345_s3, %s1339_s24 }
  0x2f   : > { %1214 = vmatmul.mubr.msk.f32.vlgmr.msra.gmra.mrb[0].mxu1 %vm490_vm1, %v482_v14  ;;  %1224 = vmatprep.mubr.msk.f32.mxu0 %vm1496_vm0, %v1497_v1  ;;  %p1341_p1 = pnand %p1340_p0, %p1604_p3 }
  0x30   : > { %1228 = vmatpush3.msra.mxu1 %v485_v15  ;;  %1229 = vmatprep.mubr.msk.f32.mxu1 %vm1496_vm0, %v1497_v1  ;;  %p1348_p6 = por %p1347_p5, %p1346_p4 }
  0x31   : > { %1232 = vmatprep.subr.mxu1 %v1497_v1  ;;  %1251 = vmatpush3.bf16.msra.mxu0 %v1250_v18  ;;  %p1342_p2 = pneg %p1341_p1 }
  0x32   : > { %1252 = vmatprep.subr.bf16.mxu0 %v1495_v0 }
  0x33   : > { %p1349_p7 = pnand %p1348_p6, %p1342_p2 }
  0x35   : > { %1254 = vmatpush3.bf16.msra.mxu0 %v1253_v21 }
  0x38   : > { %1225 = vmatmul.mubr.msk.f32.vlgmr.msra.gmra.mrb[2].mxu0 %vm490_vm1, %v482_v14 }
 0x101   : > { %v560_v22 = vpop.f32.mrb[0].mxu0 }
 0x102   : > { %v1204_v23 = vpop.f32.mrb[1].mxu0  ;;  %1230 = vmatmul.mubr.msk.f32.vlgmr.msra.gmra.mrb[2].mxu1 %vm712_vm2, %v560_v22  ;;  %v634_v24 = vpop.f32.mrb[0].mxu1  ;;  %v786_v31 = vmul.f32 %v560_v22, %v483_v28 }
 0x103   : > { %1233 = vmatpush3.msra.mxu1 %v485_v15  ;;  %v1215_v25 = vpop.f32.mrb[1].mxu1  ;;  %1234 = vmatprep.mubr.msk.f32.mxu1 %vm1496_vm0, %v1497_v1  ;;  %v863_v36 = vmul.f32 %v634_v24, %v483_v28 }
 0x106   : > { %1235 = vmatmul.mubr.msk.f32.vlgmr.msra.gmra.mrb[4].mxu1 %vm712_vm2, %v634_v24 }
 0x10b   : > { %v708_v26 = vpop.f32.mrb[2].mxu0 }
 0x10c   : > { %867 = vst.msk [vmem:[%s451_s28] sm:$0xff] %vm712_vm2, %v708_v26  ;;  %v1226_v27 = vpop.f32.mrb[3].mxu0 }
 0x1d5   : > { %v782_v30 = vpop.f32.mrb[2].mxu1 }
 0x1d6   : > { %v787_v32 = vmul.f32 %v782_v30, %v484_v29  ;;  %v1231_v33 = vpop.f32.mrb[3].mxu1 }
 0x1d8   : > { %v788_v34 = vadd.f32 %v787_v32, %v786_v31 }
 0x1d9   : > { %v859_v35 = vpop.f32.mrb[4].mxu1 }
 0x1da   : > { %v864_v37 = vmul.f32 %v859_v35, %v484_v29  ;;  %v1236_v38 = vpop.f32.mrb[5].mxu1  ;;  %789 = vst.msk [vmem:[%s437_s0] sm:$0xff] %vm712_vm2, %v788_v34 }
 0x1db   : > { %1352 = shalt.err (!%p1349_p7)
}
 0x1dc   : > { %s1353_s0 = scalar_lea.hbm %s1684_s18, 128  ;;  %s1357_s17 = scalar_lea.hbm %s1822_s7, 1024 }
 0x1dd   : > { %p1354_p9 = scmp.ne.s32.totalorder %s1684_s18, %s1353_s0  ;;  %p1358_p12 = scmp.lt.u32.totalorder %s1684_s18, %s1822_s7 }
 0x1de   : > { %p1359_p13 = scmp.lt.u32.totalorder %s1357_s17, %s1353_s0  ;;  %p1361_p1 = scmp.lt.u32.totalorder %s1353_s0, %s1684_s18 }
 0x1df   : > { %p1355_p10 = pnand %p1354_p9, %p1604_p3 }
 0x1e0   : > { %p1360_p0 = por %p1359_p13, %p1358_p12 }
 0x1e1   : > { %p1356_p11 = pneg %p1355_p10 }
 0x1e2   : > { %p1362_p2 = por %p1361_p1, %p1360_p0 }
 0x1e4   : > { %p1363_p4 = pnand %p1362_p2, %p1356_p11 }
 0x1e6   : > { %1366 = shalt.err (!%p1363_p4)
}
 0x1e7   : > { %1255 = dma.vmem_to_hbm [thread:$0]  (%p1604_p3), %s1686_s1, 128, %s1684_s18, %s869_s13   ;;  %v865_v39 = vadd.f32 %v864_v37, %v863_v36 }
 0x1e8   : > { %s1721_s24 = scalar_lea.hbm %s1823_s8, %s1673_s29  ;;  %s1733_s28 = scalar_lea.hbm %s1824_s9, %s1673_s29 }
 0x1e9   : > { %s1843_s1 = scalar_lea.vmem [#allocation4], %s1661_s26  ;;  %s874_s18 = scalar_lea.sflag [#allocation5], %s1678_s12 }
 0x1ea   : > { %866 = vst.msk [vmem:[%s1843_s1] sm:$0xff] %vm712_vm2, %v865_v39  ;;  %s1367_s13 = scalar_lea.vmem %s1724_s19, 128  ;;  %s1499_s17 = smov [#allocation4]  }
 0x1eb   : > { %p1368_p5 = scmp.ne.s32.totalorder %s1724_s19, %s1367_s13  ;;  %s1371_s2 = sshll.u32 %s1499_s17, 4  ;;  %s1372_s2 = int_to_ptr.vmem [resolvable:$false] %s1371_s2 }
 0x1ec   : > { %s1373_s3 = scalar_lea.vmem %s1372_s2, 256  ;;  %p1374_p9 = scmp.lt.s32.totalorder %s1724_s19, %s1372_s2 }
 0x1ed   : > { %p1369_p6 = pnand %p1368_p5, %p1604_p3  ;;  %p1375_p10 = scmp.lt.s32.totalorder %s1373_s3, %s1367_s13 }
 0x1ef   : > { %p1370_p7 = pneg %p1369_p6  ;;  %p1376_p11 = por %p1375_p10, %p1374_p9 }
 0x1f1   : > { %p1377_p12 = pnand %p1376_p11, %p1370_p7 }
 0x1f3   : > { %1380 = shalt.err (!%p1377_p12)
}
 0x1f4   : > { %s1381_s26 = scalar_lea.hbm %s1721_s24, 128  ;;  %s1385_s0 = scalar_lea.hbm %s1823_s8, 1024 }
 0x1f5   : > { %p1382_p13 = scmp.ne.s32.totalorder %s1721_s24, %s1381_s26  ;;  %p1386_p2 = scmp.lt.u32.totalorder %s1721_s24, %s1823_s8 }
 0x1f6   : > { %p1387_p4 = scmp.lt.u32.totalorder %s1385_s0, %s1381_s26  ;;  %p1389_p6 = scmp.lt.u32.totalorder %s1381_s26, %s1721_s24 }
 0x1f7   : > { %p1383_p0 = pnand %p1382_p13, %p1604_p3 }
 0x1f8   : > { %p1388_p5 = por %p1387_p4, %p1386_p2 }
 0x1f9   : > { %p1384_p1 = pneg %p1383_p0 }
 0x1fa   : > { %p1390_p7 = por %p1389_p6, %p1388_p5 }
 0x1fc   : > { %p1391_p9 = pnand %p1390_p7, %p1384_p1 }
 0x1fe   : > { %1394 = shalt.err (!%p1391_p9)
}
 0x1ff   : > { %1256 = dma.vmem_to_hbm [thread:$0]  (%p1604_p3), %s1724_s19, 128, %s1721_s24, %s874_s18  }
 0x200   : > { %s1395_s13 = scalar_lea.vmem %s1727_s20, 128  ;;  %s1500_s17 = smov [#allocation6]  }
 0x201   : > { %p1396_p10 = scmp.ne.s32.totalorder %s1727_s20, %s1395_s13  ;;  %s1399_s2 = sshll.u32 %s1500_s17, 4  ;;  %s1400_s2 = int_to_ptr.vmem [resolvable:$false] %s1399_s2 }
 0x202   : > { %s1401_s3 = scalar_lea.vmem %s1400_s2, 256  ;;  %p1402_p13 = scmp.lt.s32.totalorder %s1727_s20, %s1400_s2 }
 0x203   : > { %p1397_p11 = pnand %p1396_p10, %p1604_p3  ;;  %p1403_p0 = scmp.lt.s32.totalorder %s1401_s3, %s1395_s13 }
 0x205   : > { %p1398_p12 = pneg %p1397_p11  ;;  %p1404_p1 = por %p1403_p0, %p1402_p13 }
 0x207   : > { %p1405_p2 = pnand %p1404_p1, %p1398_p12 }
 0x209   : > { %1408 = shalt.err (!%p1405_p2)
}
 0x20a   : > { %s1409_s19 = scalar_lea.hbm %s1733_s28, 128  ;;  %s1413_s29 = scalar_lea.hbm %s1824_s9, 1024 }
 0x20b   : > { %p1410_p4 = scmp.ne.s32.totalorder %s1733_s28, %s1409_s19  ;;  %p1414_p7 = scmp.lt.u32.totalorder %s1733_s28, %s1824_s9 }
 0x20c   : > { %p1415_p9 = scmp.lt.u32.totalorder %s1413_s29, %s1409_s19  ;;  %p1417_p11 = scmp.lt.u32.totalorder %s1409_s19, %s1733_s28 }
 0x20d   : > { %p1411_p5 = pnand %p1410_p4, %p1604_p3 }
 0x20e   : > { %p1416_p10 = por %p1415_p9, %p1414_p7 }
 0x20f   : > { %p1412_p6 = pneg %p1411_p5 }
 0x210   : > { %p1418_p12 = por %p1417_p11, %p1416_p10 }
 0x212   : > { %p1419_p13 = pnand %p1418_p12, %p1412_p6 }
 0x214   : > { %1422 = shalt.err (!%p1419_p13)
}
 0x215   : > { %1257 = dma.vmem_to_hbm [thread:$0]  (%p1604_p3), %s1727_s20, 128, %s1733_s28, %s874_s18  }
 0x216 PF: > { %p1271_p0 = scmp.ge.s32.totalorder %s1493_s16, 2  ;;  %s939_s21 = sand.u32 1, %s1465_s30  }
 0x217   : > { %s940_s1 = scalar_lea.sflag [#allocation3], %s939_s21 }
 0x218   : > { %p1262_p1 = pnand %p1271_p0, %p1615_p8 }
 0x21a   : > { %1456 = dma.done.wait (!%p1262_p1), %s940_s1, 128  }
 0x21b   : > { %1458 = vsyncadd (!%p1262_p1), %s940_s1, 4294967168  ;;  %s1844_s13 = sadd.s32 4294967294, %s1493_s16  }
 0x21c   : > { %s948_s17 = sand.u32 1, %s1844_s13  }
 0x21d   : > { %s949_s22 = scalar_lea.sflag [#allocation5], %s948_s17 }
 0x21e   : > { %1460 = dma.done.wait (!%p1262_p1), %s949_s22, 256  }
 0x21f   : > { %1462 = vsyncadd (!%p1262_p1), %s949_s22, 4294967040  ;;  %s26_s16 = sadd.s32 1, %s1493_s16   ;;  %s1845_s20 = sld [smem:[#allocation9_spill]] }
 0x220   : > { %p23_p3 = scmp.ge.s32.totalorder %s26_s16, 10   ;;  %s1846_s23 = sld [smem:[#allocation10_spill]] }
 0x221   : > { %s1847_s30 = smov %s1469_s10  ;;  %s1848_s10 = smov %s1473_s11 }
 0x222   : > { %s1849_s11 = smov %s1624_s27  ;;  %s1850_s12 = smov %s1485_s14 }
 0x223   : > { %s1851_s13 = smov %s1489_s15  ;;  %25 = sbr.rel (!%p23_p3) target bundleno = 12 (0xc), region = 130 }
 0x225   : > { %s1852_s14 = smov %s1845_s20 }
 0x226   : > { %s1853_s15 = smov %s1846_s23 }
 0x22a   :  { %963 = vsyncpa [#allocation3], 1 }
 0x22b   :  { %965 = vsyncpa [#allocation3 + $0x1], 1 }
 0x22c   :  { %966 = vsyncpa [#allocation5], 1 }
 0x22d   :  { %968 = vsyncpa [#allocation5 + $0x1], 1 }

</bundles_post_ra>
